<compile_context>
chip_gen: v5e
topology: v5e:2x2
jax: 0.10.0
libtpu: 0.0.40
codegen_flags: <defaults>
</compile_context>

<pallas_src>
import jax
import jax.numpy as jnp
from jax import lax
from jax.experimental import pallas as pl
from jax.experimental.pallas import tpu as pltpu


_LANES = 128     # vreg lane width
_SUBLANES = 8    # vreg sublane depth (f32)
# Mask/pad logit whose BCE-with-logits term (with target 0) is exactly 0 in f32:
#   max(x,0)=0, x*0=-0.0, log1p(exp(-|x|))=log1p(0)=0   (finite; do NOT use -inf).
_PAD_LOGIT = -1e30
# ~256 rows x 128 lanes per inner sub-chunk keeps the handful of f32
# temporaries in the BCE expression at ~0.5 MiB instead of multi-MiB spills.
_CHUNK_ELEMS = 256 * 128


def _round_up(a, b):
    return ((a + b - 1) // b) * b


def _round_down(a, b):
    return (a // b) * b


def _device_kind():
    try:
        return jax.devices()[0].device_kind.lower()
    except Exception:
        return ""


def _is_v7x(kind):
    return ("v7" in kind) or ("7x" in kind)


def _make_kernel(*, tr, chunk_rows, n_valid_rows, n_blocks_per_core,
                 needs_mask, c_dim):
    """Builds the kernel with all tiling parameters baked in statically."""
    n_chunks = tr // chunk_rows

    def accumulate(x_raw, z_raw, row_offset, block_start, acc_ref):
        x = x_raw.astype(jnp.float32)
        z = z_raw.astype(jnp.float32)
        if needs_mask:
            # Mask BEFORE the exp/log: rows past the end of the array contain
            # unspecified VMEM bits. Duplicate (clamped) blocks have
            # block_start >= n_valid_rows and are fully zeroed here too.
            rid = row_offset + lax.broadcasted_iota(jnp.int32, x.shape, 0)
            valid = (block_start + rid) < n_valid_rows
            x = jnp.where(valid, x, _PAD_LOGIT)
            z = jnp.where(valid, z, 0.0)
        # Numerically-stable BCE with logits (PyTorch formula):
        #   max(x, 0) - x*z + log1p(exp(-|x|))
        elem = jnp.maximum(x, 0.0) - x * z + jnp.log1p(jnp.exp(-jnp.abs(x)))
        if chunk_rows % _SUBLANES == 0:
            # Fold sublane-tile slabs elementwise (VPU adds, no cross-lane reduce).
            partial = elem.reshape(-1, _SUBLANES, c_dim).sum(axis=0)
            acc_ref[...] += partial[None]
        else:
            # Tiny-batch fallback (N < 8): single cross-sublane reduce.
            acc_ref[:, 0:1, :] += jnp.sum(elem, axis=0, keepdims=True)[None]

    def kernel(x_ref, z_ref, acc_ref):
        c = pl.program_id(0)   # core split ("parallel")
        i = pl.program_id(1)   # reduction blocks ("arbitrary")

        @pl.when(i == 0)
        def _():
            acc_ref[...] = jnp.zeros_like(acc_ref)

        # Unclamped global row offset of this block (used only by the mask).
        block_start = (c * n_blocks_per_core + i) * tr

        if n_chunks == 1:
            accumulate(x_ref[...], z_ref[...], 0, block_start, acc_ref)
        else:
            def body(k, carry):
                r0 = pl.multiple_of(k * chunk_rows, chunk_rows)
                accumulate(x_ref[pl.ds(r0, chunk_rows), :],
                           z_ref[pl.ds(r0, chunk_rows), :],
                           r0, block_start, acc_ref)
                return carry
            lax.fori_loop(0, n_chunks, body, 0, unroll=True)

    return kernel


def weighted_multilabel(outputs, targets, weights, *,
                        targets_dtype=jnp.bfloat16,
                        tile_elems=None, num_core_splits=None):
    """BCEWithLogitsLoss(reduction='mean')(outputs, targets) * weights -> (1, C).

    outputs, targets: (N, C); weights: (C,).

    targets_dtype=bfloat16 (default) halves the targets HBM stream; it is exact
    for {0,1} hard labels (and bf16-representable soft labels). Pass
    targets_dtype=None to stream targets in their original dtype. Logits are
    streamed in their native dtype; all in-kernel math is f32.
    """
    N, C = outputs.shape
    assert targets.shape == (N, C)
    assert weights.shape == (C,)
    total = N * C

    if targets_dtype is not None and targets.dtype != jnp.dtype(targets_dtype):
        # In a jitted training step this cast fuses with the producer of `targets`.
        targets = targets.astype(targets_dtype)

    kind = _device_kind()
    if num_core_splits is None:
        # v7x: 2 TensorCores/chip -> shard the "parallel" axis. v5e/v6e: 1 TC,
        # a >1 split is just a sequential loop plus wasted rounding work.
        num_core_splits = 2 if _is_v7x(kind) else 1
    if tile_elems is None:
        # ~2 MiB f32 / input / block on v7x (64 MiB VMEM), ~4 MiB on v5e/v6e (128 MiB).
        tile_elems = (512 * 1024) if _is_v7x(kind) else (1024 * 1024)

    # Second-minor block alignment: 8 for 32-bit, 16 for 16-bit, 32 for 8-bit.
    min_itemsize = min(jnp.dtype(outputs.dtype).itemsize,
                       jnp.dtype(targets.dtype).itemsize)
    align = {4: _SUBLANES, 2: 16, 1: 32}.get(min_itemsize, _SUBLANES)

    c_pad = _round_up(C, _LANES)          # physical lane footprint of one row

    if N <= align:
        tr = chunk_rows = N               # single full-dim block
    else:
        max_rows_aligned = _round_down(N, align)
        chunk_rows = max(align, _round_down(_CHUNK_ELEMS // c_pad, align))
        chunk_rows = min(chunk_rows, max_rows_aligned)
        chunks_per_block = max(1, tile_elems // (chunk_rows * c_pad))
        tr = min(chunk_rows * chunks_per_block,
                 _round_down(max_rows_aligned, chunk_rows))
        tr = max(tr, chunk_rows)

    n_blocks_total = pl.cdiv(N, tr)
    num_core_splits = max(1, min(num_core_splits, n_blocks_total))
    n_blocks_per_core = pl.cdiv(n_blocks_total, num_core_splits)
    needs_mask = (N % tr != 0) or \
                 (n_blocks_per_core * num_core_splits != n_blocks_total)

    if n_blocks_per_core * num_core_splits == n_blocks_total:
        def in_map(c, i):
            return (c * n_blocks_per_core + i, 0)
    else:
        last = n_blocks_total - 1

        def in_map(c, i):
            # Clamp so the DMA never targets a fully out-of-range block; the
            # duplicate work is zeroed by the in-kernel row mask.
            return (jnp.minimum(c * n_blocks_per_core + i, last), 0)

    kernel = _make_kernel(tr=tr, chunk_rows=chunk_rows, n_valid_rows=N,
                          n_blocks_per_core=n_blocks_per_core,
                          needs_mask=needs_mask, c_dim=C)

    partials = pl.pallas_call(
        kernel,
        out_shape=jax.ShapeDtypeStruct(
            (num_core_splits, _SUBLANES, C), jnp.float32),
        grid_spec=pltpu.PrefetchScalarGridSpec(
            num_scalar_prefetch=0,
            grid=(num_core_splits, n_blocks_per_core),
            in_specs=[
                pl.BlockSpec((tr, C), in_map),     # logits, native dtype
                pl.BlockSpec((tr, C), in_map),     # targets (bf16 by default)
            ],
            out_specs=pl.BlockSpec(
                (1, _SUBLANES, C), lambda c, i: (c, 0, 0)),
        ),
        compiler_params=pltpu.CompilerParams(
            dimension_semantics=("parallel", "arbitrary"),
            vmem_limit_bytes=(32 if _is_v7x(kind) else 64) * 1024 * 1024,
        ),
    )(outputs, targets)

    # Epilogue in plain JAX: scalar mean over the TRUE element count, then the
    # (1, C) weight broadcast (lane-sparse store kept out of the kernel).
    mean_loss = jnp.sum(partials, dtype=jnp.float32) / total
    return weights.astype(jnp.float32).reshape(1, C) * mean_loss


def _reference(outputs, targets, weights):
    x = outputs.astype(jnp.float32)
    z = targets.astype(jnp.float32)
    elem = jnp.maximum(x, 0.0) - x * z + jnp.log1p(jnp.exp(-jnp.abs(x)))
    return weights.reshape(1, -1).astype(jnp.float32) * jnp.mean(elem)


if __name__ == "__main__":
    key = jax.random.PRNGKey(0)
    k1, k2, k3 = jax.random.split(key, 3)

    N, C = 16, 32
    outputs = jax.random.normal(k1, (N, C), dtype=jnp.float32)            # logits
    targets = jax.random.bernoulli(k2, 0.5, (N, C)).astype(jnp.float32)   # {0,1}
    weights = jax.random.uniform(k3, (C,), dtype=jnp.float32)             # per-class weights

    result = jax.block_until_ready(weighted_multilabel(outputs, targets, weights))

    ref = _reference(outputs, targets, weights)
    assert result.shape == (1, C)
    assert jnp.allclose(result, ref, atol=1e-5, rtol=1e-5)

    print("KERNEL_OK")
</pallas_src>

<mosaic_0001>
module attributes {stable_mosaic.version = 11 : i64} {
  func.func @kernel(%arg0: i32, %arg1: i32, %arg2: memref<16x32xf32, #tpu.memory_space<vmem>>, %arg3: memref<16x32xbf16, #tpu.memory_space<vmem>>, %arg4: memref<1x8x32xf32, #tpu.memory_space<vmem>>) attributes {dimension_semantics = [#tpu.dimension_semantics<parallel>, #tpu.dimension_semantics<arbitrary>], iteration_bounds = array<i64: 1, 1>, scalar_prefetch = 0 : i64, scratch_operands = 0 : i64, tpu.core_type = #tpu.core_type<tc>, window_params = [{transform_indices = @transform_0, window_bounds = array<i64: 16, 32>}, {transform_indices = @transform_1, window_bounds = array<i64: 16, 32>}, {transform_indices = @transform_2, window_bounds = array<i64: 1, 8, 32>}]} {
    %c0_i32 = arith.constant 0 : i32
    %0 = arith.cmpi eq, %arg1, %c0_i32 : i32
    %1 = arith.extui %0 : i1 to i32
    %c0_i32_0 = arith.constant 0 : i32
    %2 = arith.cmpi ne, %1, %c0_i32_0 : i32
    scf.if %2 {
      %cst_12 = arith.constant 0.000000e+00 : f32
      %22 = vector.broadcast %cst_12 : f32 to vector<1x8x32xf32>
      %c0_13 = arith.constant 0 : index
      %c0_14 = arith.constant 0 : index
      %c0_15 = arith.constant 0 : index
      %23 = vector.load %arg4[%c0_13, %c0_14, %c0_15] : memref<1x8x32xf32, #tpu.memory_space<vmem>>, vector<1x8x32xf32>
      tpu.vector_store %arg4[%c0_13, %c0_14, %c0_15], %22 {strides = array<i32>} : memref<1x8x32xf32, #tpu.memory_space<vmem>>, vector<1x8x32xf32>,
    } else {
    }
    %c0 = arith.constant 0 : index
    %c0_1 = arith.constant 0 : index
    %3 = vector.load %arg2[%c0, %c0_1] : memref<16x32xf32, #tpu.memory_space<vmem>>, vector<16x32xf32>
    %c0_2 = arith.constant 0 : index
    %c0_3 = arith.constant 0 : index
    %4 = vector.load %arg3[%c0_2, %c0_3] : memref<16x32xbf16, #tpu.memory_space<vmem>>, vector<16x32xbf16>
    %5 = arith.extf %4 : vector<16x32xbf16> to vector<16x32xf32>
    %cst = arith.constant 0.000000e+00 : f32
    %6 = vector.broadcast %cst : f32 to vector<16x32xf32>
    %7 = arith.maximumf %3, %6 : vector<16x32xf32>
    %8 = arith.mulf %3, %5 : vector<16x32xf32>
    %9 = arith.subf %7, %8 : vector<16x32xf32>
    %10 = math.absf %3 : vector<16x32xf32>
    %cst_4 = arith.constant 0.000000e+00 : f32
    %11 = vector.broadcast %cst_4 : f32 to vector<16x32xf32>
    %12 = arith.subf %11, %10 : vector<16x32xf32>
    %13 = math.exp %12 : vector<16x32xf32>
    %14 = math.log1p %13 : vector<16x32xf32>
    %15 = arith.addf %9, %14 : vector<16x32xf32>
    %16 = vector.shape_cast %15 : vector<16x32xf32> to vector<2x8x32xf32>
    %cst_5 = arith.constant dense<0.000000e+00> : vector<8x32xf32>
    %17 = vector.multi_reduction <add>, %16, %cst_5 [0] : vector<2x8x32xf32> to vector<8x32xf32>
    %c0_6 = arith.constant 0 : index
    %c0_7 = arith.constant 0 : index
    %c0_8 = arith.constant 0 : index
    %18 = vector.load %arg4[%c0_6, %c0_7, %c0_8] : memref<1x8x32xf32, #tpu.memory_space<vmem>>, vector<1x8x32xf32>
    %19 = vector.shape_cast %17 : vector<8x32xf32> to vector<1x8x32xf32>
    %20 = arith.addf %18, %19 : vector<1x8x32xf32>
    %c0_9 = arith.constant 0 : index
    %c0_10 = arith.constant 0 : index
    %c0_11 = arith.constant 0 : index
    %21 = vector.load %arg4[%c0_9, %c0_10, %c0_11] : memref<1x8x32xf32, #tpu.memory_space<vmem>>, vector<1x8x32xf32>
    tpu.vector_store %arg4[%c0_9, %c0_10, %c0_11], %20 {strides = array<i32>} : memref<1x8x32xf32, #tpu.memory_space<vmem>>, vector<1x8x32xf32>,
    return
  }
  func.func @transform_0(%arg0: i32, %arg1: i32) -> (i32, i32) {
    %c1_i32 = arith.constant 1 : i32
    %0 = arith.muli %arg0, %c1_i32 : i32
    %1 = arith.addi %0, %arg1 : i32
    %c0_i32 = arith.constant 0 : i32
    %c0_i32_0 = arith.constant 0 : i32
    return %1, %c0_i32 : i32, i32
  }
  func.func @transform_1(%arg0: i32, %arg1: i32) -> (i32, i32) {
    %c1_i32 = arith.constant 1 : i32
    %0 = arith.muli %arg0, %c1_i32 : i32
    %1 = arith.addi %0, %arg1 : i32
    %c0_i32 = arith.constant 0 : i32
    %c0_i32_0 = arith.constant 0 : i32
    return %1, %c0_i32 : i32, i32
  }
  func.func @transform_2(%arg0: i32, %arg1: i32) -> (i32, i32, i32) {
    %c0_i32 = arith.constant 0 : i32
    %c0_i32_0 = arith.constant 0 : i32
    %c0_i32_1 = arith.constant 0 : i32
    return %arg0, %c0_i32, %c0_i32_0 : i32, i32, i32
  }
}

</mosaic_0001>

<bundles_post_ra>
// kernel: tpu_custom_call.1
= control target key start
LH: loop header
LB: loop body
LE: loop exit
PB: predicated region body
PF: predicated region fallthrough
CT: control target
= control target key end

     0   :  { %7 = vsyncpa [#allocation3], 0  ;;  %s261_s0 = inlined_call_operand.hbm [shape: f32[16,32], index: 0, kind: input, shape index: {}]   ;;  %s262_s1 = inlined_call_operand.hbm [shape: bf16[16,32], index: 1, kind: input, shape index: {}]   ;;  %s263_s2 = inlined_call_operand.hbm [shape: f32[1,8,32], index: 2, kind: output, shape index: {}]  }
   0x1   :  { %8 = vsyncpa [#allocation6], 0 }
   0x2   :  { %9 = vsyncpa [#allocation4], 0  ;;  %s18_s11 = sshll.u32 %s261_s0, 4  ;;  %s225_s12 = smov [#allocation2]   ;;  %s19_s11 = int_to_ptr.hbm [resolvable:$true] %s18_s11 }
   0x3   :  { %s20_s13 = sshll.u32 %s225_s12, 4  ;;  %s35_s16 = sshll.u32 %s262_s1, 4  ;;  %s21_s13 = int_to_ptr.vmem [resolvable:$true] %s20_s13  ;;  %s36_s16 = int_to_ptr.hbm [resolvable:$true] %s35_s16 }
   0x4   :  { %s226_s17 = smov 128   ;;  %s227_s18 = smov 8  }
   0x5   :  { %26 = dma.hbm_to_vmem [thread:$0]  %s19_s11, 256, %s21_s13, [#allocation3], %s226_s17, %s226_s17, %s227_s18  }
   0x6   :  { %s228_s19 = smov [#allocation5]   ;;  %s229_s21 = smov 64  }
   0x7   :  { %s37_s20 = sshll.u32 %s228_s19, 4  ;;  %s230_s22 = smov 4   ;;  %s38_s20 = int_to_ptr.vmem [resolvable:$true] %s37_s20 }
   0x8   :  { %43 = dma.hbm_to_vmem [thread:$0]  %s36_s16, 128, %s38_s20, [#allocation6], %s229_s21, %s229_s21, %s230_s22  }
   0x9   :  { %219 = dma.done.wait [#allocation3], 256  }
   0xa   :  { %220 = vsyncadd [#allocation3], 4294967040 }
   0xb   :  { %221 = dma.done.wait [#allocation6], 128  }
   0xc   :  { %222 = vsyncadd [#allocation6], 4294967168  ;;  %vm60_vm0 = vcmask 261120   ;;  %v231_v0 = vmov 0.0   ;;  %v62_v1 = vld [vmem:[#allocation2] sm:$0xff]  ;;  %v63_v2 = vld [vmem:[#allocation2 + $0x8] sm:$0xff] }
   0xd   :  { %61 = vst.msk [vmem:[#allocation7] sm:$0xff] %vm60_vm0, %v231_v0  ;;  %v74_v3 = vand.u32 2147483647, %v62_v1  ;;  %v75_v4 = vand.u32 2147483647, %v63_v2  ;;  %v128_v9 = vld [vmem:[#allocation5] sm:$0xff]  }
   0xe   :  { %v129_v12 = vunpack.c.l.bf16 %v128_v9  ;;  %v130_v15 = vunpack.c.h.bf16 %v128_v9  ;;  %v68_v19 = vmax.f32 %v62_v1, 0.0  ;;  %v69_v23 = vmax.f32 %v63_v2, 0.0  ;;  %s232_s0 = smov [#allocation7]   ;;  %s116_s25 = sshll.u32 %s263_s2, 4  ;;  %s117_s25 = int_to_ptr.hbm [resolvable:$true] %s116_s25 }
   0xf   :  { %v76_v5 = vsub.f32 0.0, %v74_v3  ;;  %v77_v6 = vsub.f32 0.0, %v75_v4  ;;  %s114_s1 = sshll.u32 %s232_s0, 4  ;;  %s115_s1 = int_to_ptr.vmem [resolvable:$true] %s114_s1 }
  0x10   :  { %v70_v20 = vmul.f32 %v129_v12, %v62_v1  ;;  %v71_v24 = vmul.f32 %v130_v15, %v63_v2 }
  0x11   :  { %v78_v7 = vmul.f32 1.442695, %v76_v5  ;;  %v80_v8 = vmul.f32 1.442695, %v77_v6 }
  0x12   :  { %v72_v28 = vsub.f32 %v68_v19, %v70_v20  ;;  %v73_v31 = vsub.f32 %v69_v23, %v71_v24 }
  0x13   :  { %139 = vpow2.f32 %v78_v7 }
  0x14   :  { %141 = vpow2.f32 %v80_v8  ;;  %v106_v40 = vld [vmem:[#allocation7] sm:$0xff] }
  0x19   :  { %v140_v10 = vpop.eup %139 }
  0x1a   :  { %v142_v11 = vpop.eup %141  ;;  %v82_v13 = vadd.f32 1.0, %v140_v10  ;;  %v85_v14 = vmul.f32 -0.5, %v140_v10  ;;  %v88_v21 = vand.u32 2147483647, %v140_v10 }
  0x1b   :  { %v91_v16 = vadd.f32 1.0, %v142_v11  ;;  %v94_v17 = vmul.f32 -0.5, %v142_v11  ;;  %v97_v25 = vand.u32 2147483647, %v142_v11 }
  0x1c   :  { %143 = vlog2.f32 %v82_v13  ;;  %v86_v18 = vadd.f32 1.0, %v85_v14  ;;  %vm89_vm1 = vcmp.lt.f32.partialorder %v88_v21, 0.0004427343 }
  0x1d   :  { %145 = vlog2.f32 %v91_v16  ;;  %v95_v22 = vadd.f32 1.0, %v94_v17  ;;  %vm98_vm2 = vcmp.lt.f32.partialorder %v97_v25, 0.0004427343 }
  0x1e   :  { %v87_v26 = vmul.f32 %v140_v10, %v86_v18 }
  0x1f   :  { %v96_v29 = vmul.f32 %v142_v11, %v95_v22 }
  0x22   :  { %v144_v27 = vpop.eup %143 }
  0x23   :  { %v146_v30 = vpop.eup %145  ;;  %v84_v32 = vmul.f32 0.6931472, %v144_v27 }
  0x24   :  { %v93_v33 = vmul.f32 0.6931472, %v146_v30 }
  0x25   :  { %v90_v34 = vsel %vm89_vm1, %v87_v26, %v84_v32 }
  0x26   :  { %v99_v35 = vsel %vm98_vm2, %v96_v29, %v93_v33  ;;  %v100_v36 = vadd.f32 %v90_v34, %v72_v28 }
  0x27   :  { %v101_v37 = vadd.f32 %v99_v35, %v73_v31 }
  0x28   :  { %v103_v38 = vsel %vm60_vm0, %v100_v36, 0.0 }
  0x29   :  { %v104_v39 = vsel %vm60_vm0, %v101_v37, 0.0 }
  0x2a   :  { %v105_v41 = vadd.f32 %v104_v39, %v103_v38 }
  0x2c   :  { %v107_v42 = vadd.f32 %v106_v40, %v105_v41 }
  0x2e   :  { %108 = vst.msk [vmem:[#allocation7] sm:$0xff] %vm60_vm0, %v107_v42 }
  0x2f   :  { %119 = dma.vmem_to_hbm [thread:$0]  %s115_s1, 128, %s117_s25, [#allocation4]  }
  0x30   :  { %223 = dma.done.wait [#allocation4], 128  }
  0x31   :  { %224 = vsyncadd [#allocation4], 4294967168 }
  0x32   :  { %124 = vsyncpa [#allocation3], 1 }
  0x33   :  { %125 = vsyncpa [#allocation6], 1 }
  0x34   :  { %126 = vsyncpa [#allocation4], 1 }

</bundles_post_ra>
